<compile_context>
chip_gen: v7x
topology: tpu7x:2x2x1
jax: 0.10.0
libtpu: 0.0.40
codegen_flags: <defaults>
</compile_context>

<pallas_src>
import functools

import jax
import jax.numpy as jnp
from jax import lax
from jax.experimental import pallas as pl
from jax.experimental.pallas import tpu as pltpu

LN_EPS = 1e-12
LANE = 128


def _round_up(x, m):
    return (x + m - 1) // m * m


def addnorm_kernel(x_ref, w_ref, b_ref, res_ref, gamma_ref, beta_ref, o_ref,
                   *, true_hidden: float):
    # dense: x @ W on the MXU with f32 accumulation. Zero-padded K columns of x
    # / rows of W do not change the product.
    h = jnp.dot(x_ref[...], w_ref[...], preferred_element_type=jnp.float32)
    # + bias + residual (dropout p=0.0 is the identity at inference).
    # bias/gamma/beta are pre-cast to f32 in the wrapper -> no per-tile converts.
    h = h + b_ref[...] + res_ref[...].astype(jnp.float32)

    # LayerNorm over the true hidden width, fused single reduction pass
    # (sum and sum-of-squares together -> half the XLU reductions).
    # Padded lanes of h are exactly zero, so dividing the sums by the true
    # hidden_dim yields correct mean / variance without masking.
    inv_h = 1.0 / true_hidden
    s1 = jnp.sum(h, axis=-1, keepdims=True)
    s2 = jnp.sum(h * h, axis=-1, keepdims=True)
    mean = s1 * inv_h
    var = jnp.maximum(s2 * inv_h - mean * mean, 0.0)
    norm = (h - mean) * lax.rsqrt(var + LN_EPS)
    # Padded output lanes get gamma=beta=0 -> 0; they are sliced off outside.
    o_ref[...] = (norm * gamma_ref[...] + beta_ref[...]).astype(o_ref.dtype)


def addnorm(hidden_states, in_tensor, weight, bias, gamma, beta, *,
            tm=256, matmul_dtype=None):
    """Fused Linear(in_dim->hidden_dim) + residual add + LayerNorm(eps=1e-12).

    hidden_states: [..., in_dim]; in_tensor: [..., hidden_dim];
    weight: [in_dim, hidden_dim] (pre-transposed vs torch nn.Linear.weight).
    matmul_dtype: optionally jnp.bfloat16 on v6e/v7x for ~2-4x MXU throughput;
                  accumulation stays f32 so LayerNorm numerics are preserved.
    """
    in_dim = hidden_states.shape[-1]
    hidden_dim = in_tensor.shape[-1]
    lead_shape = hidden_states.shape[:-1]
    out_dtype = hidden_states.dtype

    x2d = hidden_states.reshape(-1, in_dim)
    r2d = in_tensor.reshape(-1, hidden_dim)
    M = x2d.shape[0]

    # Pad rows to the row tile and features to a multiple of 128 lanes.
    # NOTE: for v7x keep Mp // tm >= 2 so the parallel grid feeds both TCs.
    Mp = _round_up(M, tm)
    Kp = _round_up(in_dim, LANE)
    Hp = _round_up(hidden_dim, LANE)

    x2d = jnp.pad(x2d, ((0, Mp - M), (0, Kp - in_dim)))
    r2d = jnp.pad(r2d, ((0, Mp - M), (0, Hp - hidden_dim)))
    w = jnp.pad(weight, ((0, Kp - in_dim), (0, Hp - hidden_dim)))
    b2d = jnp.pad(bias.astype(jnp.float32), (0, Hp - hidden_dim)).reshape(1, Hp)
    g2d = jnp.pad(gamma.astype(jnp.float32), (0, Hp - hidden_dim)).reshape(1, Hp)
    be2d = jnp.pad(beta.astype(jnp.float32), (0, Hp - hidden_dim)).reshape(1, Hp)

    if matmul_dtype is not None:
        x2d = x2d.astype(matmul_dtype)
        w = w.astype(matmul_dtype)

    # VMEM budget: W / bias / gamma / beta are grid-invariant -> single-buffered
    # (pl.Buffered(1)); x / residual / out row tiles are double-buffered.
    w_bytes = Kp * Hp * w.dtype.itemsize
    small_bytes = 3 * Hp * 4
    tile_bytes = tm * (Kp * x2d.dtype.itemsize
                       + Hp * r2d.dtype.itemsize
                       + Hp * jnp.dtype(out_dtype).itemsize)
    vmem_limit = int(w_bytes + small_bytes + 2 * tile_bytes) + (4 << 20)
    vmem_limit = max(vmem_limit, 16 << 20)
    vmem_limit = min(vmem_limit, 96 << 20)
    # TODO(synk): v7x has only 64 MiB VMEM -- for f32 weights > ~48 MiB add an
    #             N-tiling grid axis over hidden_dim (two-pass LN) instead of a
    #             fully resident W.
    # TODO(synk): for very large in_dim on v5e, add a K reduction grid axis with
    #             a VMEM f32 accumulator + pl.when init/finalize so the resident
    #             W slab shrinks and tm can grow.

    invariant = pl.Buffered(1)

    out = pl.pallas_call(
        functools.partial(addnorm_kernel, true_hidden=float(hidden_dim)),
        out_shape=jax.ShapeDtypeStruct((Mp, Hp), out_dtype),
        grid_spec=pltpu.PrefetchScalarGridSpec(
            num_scalar_prefetch=0,
            grid=(Mp // tm,),
            in_specs=[
                pl.BlockSpec((tm, Kp), lambda i: (i, 0)),                # x tile
                pl.BlockSpec((Kp, Hp), lambda i: (0, 0),
                             pipeline_mode=invariant),                   # W (resident)
                pl.BlockSpec((1, Hp), lambda i: (0, 0),
                             pipeline_mode=invariant),                   # bias
                pl.BlockSpec((tm, Hp), lambda i: (i, 0)),                # residual
                pl.BlockSpec((1, Hp), lambda i: (0, 0),
                             pipeline_mode=invariant),                   # gamma
                pl.BlockSpec((1, Hp), lambda i: (0, 0),
                             pipeline_mode=invariant),                   # beta
            ],
            out_specs=pl.BlockSpec((tm, Hp), lambda i: (i, 0)),
        ),
        compiler_params=pltpu.CompilerParams(
            dimension_semantics=("parallel",),
            vmem_limit_bytes=vmem_limit,
        ),
    )(x2d, w, b2d, r2d, g2d, be2d)

    return out[:M, :hidden_dim].reshape(*lead_shape, hidden_dim)


def addnorm_ref(hidden_states, in_tensor, weight, bias, gamma, beta):
    h = jnp.einsum("...i,ih->...h", hidden_states, weight) + bias
    h = h + in_tensor
    mean = jnp.mean(h, axis=-1, keepdims=True)
    var = jnp.mean((h - mean) ** 2, axis=-1, keepdims=True)
    return (h - mean) / jnp.sqrt(var + LN_EPS) * gamma + beta


if __name__ == "__main__":
    batch, seq = 2, 8
    in_dim, hidden_dim = 32, 32

    key = jax.random.PRNGKey(0)
    k1, k2, k3, k4 = jax.random.split(key, 4)

    # Deterministic parameter init (PyTorch nn.Linear weight is [hidden, in];
    # we store it pre-transposed as [in, hidden] for x @ W).
    bound = 1.0 / (in_dim ** 0.5)
    weight = jax.random.uniform(k1, (in_dim, hidden_dim), jnp.float32, -bound, bound)
    bias = jax.random.uniform(k2, (hidden_dim,), jnp.float32, -bound, bound)
    gamma = jnp.ones((hidden_dim,), jnp.float32)
    beta = jnp.zeros((hidden_dim,), jnp.float32)

    hidden_states = jax.random.normal(k3, (batch, seq, in_dim), jnp.float32)
    in_tensor = jax.random.normal(k4, (batch, seq, hidden_dim), jnp.float32)

    out = addnorm(hidden_states, in_tensor, weight, bias, gamma, beta)
    out = jax.block_until_ready(out)

    ref = addnorm_ref(hidden_states, in_tensor, weight, bias, gamma, beta)
    assert out.shape == (batch, seq, hidden_dim)
    assert jnp.allclose(out, ref, atol=1e-4, rtol=1e-4), "mismatch vs reference"

    print("KERNEL_OK")
</pallas_src>

<mosaic_0001>
module attributes {stable_mosaic.version = 11 : i64} {
  func.func @addnorm_kernel(%arg0: i32, %arg1: memref<256x128xf32, #tpu.memory_space<vmem>>, %arg2: memref<128x128xf32, #tpu.memory_space<vmem>>, %arg3: memref<1x128xf32, #tpu.memory_space<vmem>>, %arg4: memref<256x128xf32, #tpu.memory_space<vmem>>, %arg5: memref<1x128xf32, #tpu.memory_space<vmem>>, %arg6: memref<1x128xf32, #tpu.memory_space<vmem>>, %arg7: memref<256x128xf32, #tpu.memory_space<vmem>>) attributes {dimension_semantics = [#tpu.dimension_semantics<parallel>], iteration_bounds = array<i64: 1>, scalar_prefetch = 0 : i64, scratch_operands = 0 : i64, tpu.core_type = #tpu.core_type<tc>, window_params = [{transform_indices = @transform_0, window_bounds = array<i64: 256, 128>}, {pipeline_mode = #tpu.pipeline_mode<synchronous>, transform_indices = @transform_1, window_bounds = array<i64: 128, 128>}, {pipeline_mode = #tpu.pipeline_mode<synchronous>, transform_indices = @transform_2, window_bounds = array<i64: 1, 128>}, {transform_indices = @transform_3, window_bounds = array<i64: 256, 128>}, {pipeline_mode = #tpu.pipeline_mode<synchronous>, transform_indices = @transform_4, window_bounds = array<i64: 1, 128>}, {pipeline_mode = #tpu.pipeline_mode<synchronous>, transform_indices = @transform_5, window_bounds = array<i64: 1, 128>}, {transform_indices = @transform_6, window_bounds = array<i64: 256, 128>}]} {
    %c0 = arith.constant 0 : index
    %c0_0 = arith.constant 0 : index
    %0 = vector.load %arg1[%c0, %c0_0] : memref<256x128xf32, #tpu.memory_space<vmem>>, vector<256x128xf32>
    %c0_1 = arith.constant 0 : index
    %c0_2 = arith.constant 0 : index
    %1 = vector.load %arg2[%c0_1, %c0_2] : memref<128x128xf32, #tpu.memory_space<vmem>>, vector<128x128xf32>
    %cst = arith.constant dense<0.000000e+00> : vector<256x128xf32>
    %2 = tpu.matmul %0, %1, %cst {dimension_numbers = #tpu.dot_dimension_numbers<[1], [0], [0], [1], [0, 0, 1, 1], [], []>} : vector<256x128xf32>, vector<128x128xf32>, vector<256x128xf32> -> vector<256x128xf32>
    %c0_3 = arith.constant 0 : index
    %c0_4 = arith.constant 0 : index
    %3 = vector.load %arg3[%c0_3, %c0_4] : memref<1x128xf32, #tpu.memory_space<vmem>>, vector<1x128xf32>
    %4 = vector.broadcast %3 : vector<1x128xf32> to vector<256x128xf32>
    %5 = arith.addf %2, %4 : vector<256x128xf32>
    %c0_5 = arith.constant 0 : index
    %c0_6 = arith.constant 0 : index
    %6 = vector.load %arg4[%c0_5, %c0_6] : memref<256x128xf32, #tpu.memory_space<vmem>>, vector<256x128xf32>
    %7 = arith.addf %5, %6 : vector<256x128xf32>
    %cst_7 = arith.constant dense<0.000000e+00> : vector<256xf32>
    %8 = vector.multi_reduction <add>, %7, %cst_7 [1] : vector<256x128xf32> to vector<256xf32>
    %9 = vector.shape_cast %8 : vector<256xf32> to vector<256x1xf32>
    %10 = arith.mulf %7, %7 : vector<256x128xf32>
    %cst_8 = arith.constant dense<0.000000e+00> : vector<256xf32>
    %11 = vector.multi_reduction <add>, %10, %cst_8 [1] : vector<256x128xf32> to vector<256xf32>
    %12 = vector.shape_cast %11 : vector<256xf32> to vector<256x1xf32>
    %cst_9 = arith.constant 3.125000e-02 : f32
    %13 = vector.broadcast %cst_9 : f32 to vector<256x1xf32>
    %14 = arith.mulf %9, %13 : vector<256x1xf32>
    %cst_10 = arith.constant 3.125000e-02 : f32
    %15 = vector.broadcast %cst_10 : f32 to vector<256x1xf32>
    %16 = arith.mulf %12, %15 : vector<256x1xf32>
    %17 = arith.mulf %14, %14 : vector<256x1xf32>
    %18 = arith.subf %16, %17 : vector<256x1xf32>
    %cst_11 = arith.constant 0.000000e+00 : f32
    %19 = vector.broadcast %cst_11 : f32 to vector<256x1xf32>
    %20 = arith.maximumf %18, %19 : vector<256x1xf32>
    %21 = vector.broadcast %14 : vector<256x1xf32> to vector<256x128xf32>
    %22 = arith.subf %7, %21 : vector<256x128xf32>
    %cst_12 = arith.constant 9.99999996E-13 : f32
    %23 = vector.broadcast %cst_12 : f32 to vector<256x1xf32>
    %24 = arith.addf %20, %23 : vector<256x1xf32>
    %25 = math.rsqrt %24 : vector<256x1xf32>
    %26 = vector.broadcast %25 : vector<256x1xf32> to vector<256x128xf32>
    %27 = arith.mulf %22, %26 : vector<256x128xf32>
    %c0_13 = arith.constant 0 : index
    %c0_14 = arith.constant 0 : index
    %28 = vector.load %arg5[%c0_13, %c0_14] : memref<1x128xf32, #tpu.memory_space<vmem>>, vector<1x128xf32>
    %29 = vector.broadcast %28 : vector<1x128xf32> to vector<256x128xf32>
    %30 = arith.mulf %27, %29 : vector<256x128xf32>
    %c0_15 = arith.constant 0 : index
    %c0_16 = arith.constant 0 : index
    %31 = vector.load %arg6[%c0_15, %c0_16] : memref<1x128xf32, #tpu.memory_space<vmem>>, vector<1x128xf32>
    %32 = vector.broadcast %31 : vector<1x128xf32> to vector<256x128xf32>
    %33 = arith.addf %30, %32 : vector<256x128xf32>
    %c0_17 = arith.constant 0 : index
    %c0_18 = arith.constant 0 : index
    %34 = vector.load %arg7[%c0_17, %c0_18] : memref<256x128xf32, #tpu.memory_space<vmem>>, vector<256x128xf32>
    tpu.vector_store %arg7[%c0_17, %c0_18], %33 {strides = array<i32>} : memref<256x128xf32, #tpu.memory_space<vmem>>, vector<256x128xf32>,
    return
  }
  func.func @transform_0(%arg0: i32) -> (i32, i32) {
    %c0_i32 = arith.constant 0 : i32
    %c0_i32_0 = arith.constant 0 : i32
    return %arg0, %c0_i32 : i32, i32
  }
  func.func @transform_1(%arg0: i32) -> (i32, i32) {
    %c0_i32 = arith.constant 0 : i32
    %c0_i32_0 = arith.constant 0 : i32
    %c0_i32_1 = arith.constant 0 : i32
    return %c0_i32, %c0_i32_0 : i32, i32
  }
  func.func @transform_2(%arg0: i32) -> (i32, i32) {
    %c0_i32 = arith.constant 0 : i32
    %c0_i32_0 = arith.constant 0 : i32
    %c0_i32_1 = arith.constant 0 : i32
    return %c0_i32, %c0_i32_0 : i32, i32
  }
  func.func @transform_3(%arg0: i32) -> (i32, i32) {
    %c0_i32 = arith.constant 0 : i32
    %c0_i32_0 = arith.constant 0 : i32
    return %arg0, %c0_i32 : i32, i32
  }
  func.func @transform_4(%arg0: i32) -> (i32, i32) {
    %c0_i32 = arith.constant 0 : i32
    %c0_i32_0 = arith.constant 0 : i32
    %c0_i32_1 = arith.constant 0 : i32
    return %c0_i32, %c0_i32_0 : i32, i32
  }
  func.func @transform_5(%arg0: i32) -> (i32, i32) {
    %c0_i32 = arith.constant 0 : i32
    %c0_i32_0 = arith.constant 0 : i32
    %c0_i32_1 = arith.constant 0 : i32
    return %c0_i32, %c0_i32_0 : i32, i32
  }
  func.func @transform_6(%arg0: i32) -> (i32, i32) {
    %c0_i32 = arith.constant 0 : i32
    %c0_i32_0 = arith.constant 0 : i32
    return %arg0, %c0_i32 : i32, i32
  }
}

</mosaic_0001>

<bundles_post_ra>
// kernel: tpu_custom_call.1
= control target key start
LH: loop header
LB: loop body
LE: loop exit
PB: predicated region body
PF: predicated region fallthrough
CT: control target
= control target key end

     0   :  { %11 = vsyncpa [#allocation3], 0  ;;  %s1953_s0 = inlined_call_operand.hbm [shape: f32[256,128], index: 0, kind: input, shape index: {}]   ;;  %s1954_s1 = inlined_call_operand.hbm [shape: f32[128,128], index: 1, kind: input, shape index: {}]   ;;  %s1955_s2 = inlined_call_operand.vmem [shape: f32[1,128], index: 2, kind: input, shape index: {}]   ;;  %s1956_s3 = inlined_call_operand.hbm [shape: f32[256,128], index: 3, kind: input, shape index: {}]   ;;  %s1957_s4 = inlined_call_operand.vmem [shape: f32[1,128], index: 4, kind: input, shape index: {}]   ;;  %s1958_s5 = inlined_call_operand.vmem [shape: f32[1,128], index: 5, kind: input, shape index: {}]   ;;  %s1959_s6 = inlined_call_operand.hbm [shape: f32[256,128], index: 6, kind: output, shape index: {}]  }
   0x1   :  { %12 = vsyncpa [#allocation6], 0 }
   0x2   :  { %13 = vsyncpa [#allocation4], 0  ;;  %s1328_s21 = smov [#allocation5]   ;;  %s1329_s23 = smov [#allocation2]  }
   0x3   :  { %s31_s22 = sshll.u32 %s1328_s21, 4  ;;  %s19_s24 = sshll.u32 %s1329_s23, 4  ;;  %s32_s22 = int_to_ptr.vmem [resolvable:$true] %s31_s22  ;;  %s1369_s24 = int_to_ptr.vmem [resolvable:$true] %s19_s24 }
   0x4   :  { %s1234_s27 = scalar_lea.hbm %s1954_s1, 2048 }
   0x5   :  { %p1235_p0 = scmp.ne.s32.totalorder %s1954_s1, %s1234_s27  ;;  %p1238_p1 = scmp.lt.u32.totalorder %s1234_s27, %s1954_s1 }
   0x7   :  { %p1240_p2 = pnand %p1238_p1, %p1235_p0 }
   0x9   :  { %1243 = shalt.err (!%p1240_p2)
}
   0xa   :  { %s1244_s8 = scalar_lea.vmem %s32_s22, 2048  ;;  %p1249_p4 = scmp.lt.s32.totalorder %s32_s22, %s32_s22 }
   0xb   :  { %p1245_p3 = scmp.ne.s32.totalorder %s32_s22, %s1244_s8  ;;  %p1250_p5 = scmp.lt.s32.totalorder %s1244_s8, %s1244_s8 }
   0xd   :  { %p1251_p6 = por %p1250_p5, %p1249_p4 }
   0xf   :  { %p1252_p7 = pnand %p1251_p6, %p1245_p3 }
  0x11   :  { %1255 = shalt.err (!%p1252_p7)
}
  0x12   :  { %s1330_s9 = smov 128   ;;  %s1331_s10 = smov 8  }
  0x13   :  { %37 = dma.hbm_to_vmem [thread:$0]  %s1954_s1, 2048, %s32_s22, [#allocation6], %s1330_s9, %s1330_s9, %s1331_s10  }
  0x14   :  { %s1256_s15 = scalar_lea.hbm %s1953_s0, 4096 }
  0x15   :  { %p1257_p8 = scmp.ne.s32.totalorder %s1953_s0, %s1256_s15  ;;  %p1260_p9 = scmp.lt.u32.totalorder %s1256_s15, %s1953_s0 }
  0x17   :  { %p1262_p10 = pnand %p1260_p9, %p1257_p8 }
  0x19   :  { %1265 = shalt.err (!%p1262_p10)
}
  0x1a   :  { %s1266_s20 = scalar_lea.vmem %s1369_s24, 4096  ;;  %p1271_p12 = scmp.lt.s32.totalorder %s1369_s24, %s1369_s24 }
  0x1b   :  { %p1267_p11 = scmp.ne.s32.totalorder %s1369_s24, %s1266_s20  ;;  %p1272_p13 = scmp.lt.s32.totalorder %s1266_s20, %s1266_s20 }
  0x1d   :  { %p1273_p0 = por %p1272_p13, %p1271_p12 }
  0x1f   :  { %p1274_p1 = pnand %p1273_p0, %p1267_p11 }
  0x21   :  { %1277 = shalt.err (!%p1274_p1)
}
  0x22   :  { %25 = dma.hbm_to_vmem [thread:$0]  %s1953_s0, 4096, %s1369_s24, [#allocation3], %s1330_s9, %s1330_s9, %s1331_s10  }
  0x23   :  { %s1332_s22 = smov [#allocation7]   ;;  %s1278_s27 = scalar_lea.hbm %s1956_s3, 4096 }
  0x24   :  { %s45_s23 = sshll.u32 %s1332_s22, 4  ;;  %p1279_p2 = scmp.ne.s32.totalorder %s1956_s3, %s1278_s27  ;;  %s46_s23 = int_to_ptr.vmem [resolvable:$true] %s45_s23 }
  0x25   :  { %p1282_p3 = scmp.lt.u32.totalorder %s1278_s27, %s1956_s3 }
  0x27   :  { %p1284_p4 = pnand %p1282_p3, %p1279_p2 }
  0x29   :  { %1287 = shalt.err (!%p1284_p4)
}
  0x2a   :  { %s1288_s8 = scalar_lea.vmem %s46_s23, 4096  ;;  %p1293_p6 = scmp.lt.s32.totalorder %s46_s23, %s46_s23 }
  0x2b   :  { %p1289_p5 = scmp.ne.s32.totalorder %s46_s23, %s1288_s8  ;;  %p1294_p7 = scmp.lt.s32.totalorder %s1288_s8, %s1288_s8 }
  0x2d   :  { %p1295_p8 = por %p1294_p7, %p1293_p6 }
  0x2f   :  { %p1296_p9 = pnand %p1295_p8, %p1289_p5 }
  0x31   :  { %1299 = shalt.err (!%p1296_p9)
}
  0x32   :  { %51 = dma.hbm_to_vmem [thread:$0]  %s1956_s3, 4096, %s46_s23, [#allocation6], %s1330_s9, %s1330_s9, %s1331_s10  }
  0x33   :  { %1322 = dma.done.wait [#allocation3], 4096  }
  0x34   :  { %1323 = vsyncadd [#allocation3], 4294963200 }
  0x35   :  { %1324 = dma.done.wait [#allocation6], 6144  }
  0x36   :  { %1325 = vsyncadd [#allocation6], 4294961152  ;;  %v97_v0 = vld [vmem:[#allocation5] sm:$0xff]  ;;  %v98_v1 = vld [vmem:[#allocation5 + $0x8] sm:$0xff] }
  0x37   :  { %v99_v2 = vld [vmem:[#allocation5 + $0x10] sm:$0xff]  ;;  %v1116_v3 = vpack.c.bf16 %v98_v1, %v97_v0  ;;  %v100_v4 = vld [vmem:[#allocation5 + $0x18] sm:$0xff]  ;;  %v101_v6 = vld [vmem:[#allocation5 + $0x20] sm:$0xff] }
  0x38   :  { %v1120_v5 = vpack.c.bf16 %v100_v4, %v99_v2  ;;  %v102_v7 = vld [vmem:[#allocation5 + $0x28] sm:$0xff]  ;;  %v65_v9 = vld [vmem:[#allocation2] sm:$0xff]  ;;  %v103_v11 = vld [vmem:[#allocation5 + $0x30] sm:$0xff] }
  0x39   :  { %1117 = vmatprep.subr.bf16.mxu0 %v1116_v3  ;;  %1148 = vmatprep.subr.bf16.mxu1 %v1116_v3  ;;  %v1124_v8 = vpack.c.bf16 %v102_v7, %v101_v6  ;;  %v81_v10 = vld [vmem:[#allocation2 + $0x80] sm:$0xff]  ;;  %v104_v12 = vld [vmem:[#allocation5 + $0x38] sm:$0xff]  ;;  %v106_v15 = vld [vmem:[#allocation5 + $0x48] sm:$0xff] }
  0x3a   :  { %1119 = vmatpush3.bf16.msra.mxu0 %v1116_v3  ;;  %1156 = vmatpush3.bf16.msra.mxu1 %v1116_v3  ;;  %v1128_v13 = vpack.c.bf16 %v104_v12, %v103_v11  ;;  %v105_v14 = vld [vmem:[#allocation5 + $0x40] sm:$0xff]  ;;  %v107_v17 = vld [vmem:[#allocation5 + $0x50] sm:$0xff]  ;;  %v108_v18 = vld [vmem:[#allocation5 + $0x58] sm:$0xff] }
  0x3b   :  { %1121 = vmatprep.subr.bf16.mxu0 %v1120_v5  ;;  %1149 = vmatprep.subr.bf16.mxu1 %v1120_v5  ;;  %v1132_v16 = vpack.c.bf16 %v106_v15, %v105_v14  ;;  %v1136_v19 = vpack.c.bf16 %v108_v18, %v107_v17  ;;  %v109_v20 = vld [vmem:[#allocation5 + $0x60] sm:$0xff]  ;;  %v110_v21 = vld [vmem:[#allocation5 + $0x68] sm:$0xff]  ;;  %v111_v23 = vld [vmem:[#allocation5 + $0x70] sm:$0xff] }
  0x3c   :  { %1068 = vmatprep.mubr.f32.mxu0 %v65_v9  ;;  %1092 = vmatprep.mubr.f32.mxu1 %v81_v10  ;;  %v1140_v22 = vpack.c.bf16 %v110_v21, %v109_v20  ;;  %v112_v24 = vld [vmem:[#allocation5 + $0x78] sm:$0xff]  ;;  %v66_v26 = vld [vmem:[#allocation2 + $0x8] sm:$0xff]  ;;  %v67_v28 = vld [vmem:[#allocation2 + $0x10] sm:$0xff] }
  0x3d   :  { %v1144_v25 = vpack.c.bf16 %v112_v24, %v111_v23  ;;  %v82_v27 = vld [vmem:[#allocation2 + $0x88] sm:$0xff]  ;;  %v83_v29 = vld [vmem:[#allocation2 + $0x90] sm:$0xff]  ;;  %v68_v30 = vld [vmem:[#allocation2 + $0x18] sm:$0xff] }
  0x3e   :  { %1123 = vmatpush3.bf16.msra.mxu0 %v1120_v5  ;;  %1157 = vmatpush3.bf16.msra.mxu1 %v1120_v5  ;;  %v84_v31 = vld [vmem:[#allocation2 + $0x98] sm:$0xff]  ;;  %v69_v32 = vld [vmem:[#allocation2 + $0x20] sm:$0xff]  ;;  %v70_v34 = vld [vmem:[#allocation2 + $0x28] sm:$0xff] }
  0x3f   :  { %1125 = vmatprep.subr.bf16.mxu0 %v1124_v8  ;;  %1150 = vmatprep.subr.bf16.mxu1 %v1124_v8  ;;  %v85_v33 = vld [vmem:[#allocation2 + $0xa0] sm:$0xff]  ;;  %v86_v35 = vld [vmem:[#allocation2 + $0xa8] sm:$0xff]  ;;  %v71_v36 = vld [vmem:[#allocation2 + $0x30] sm:$0xff] }
  0x40   :  { %v87_v37 = vld [vmem:[#allocation2 + $0xb0] sm:$0xff]  ;;  %v72_v38 = vld [vmem:[#allocation2 + $0x38] sm:$0xff]  ;;  %v73_v40 = vld [vmem:[#allocation2 + $0x40] sm:$0xff] }
  0x41   :  { %v88_v39 = vld [vmem:[#allocation2 + $0xb8] sm:$0xff]  ;;  %v89_v41 = vld [vmem:[#allocation2 + $0xc0] sm:$0xff]  ;;  %v74_v42 = vld [vmem:[#allocation2 + $0x48] sm:$0xff] }
  0x42   :  { %1127 = vmatpush3.bf16.msra.mxu0 %v1124_v8  ;;  %1158 = vmatpush3.bf16.msra.mxu1 %v1124_v8  ;;  %v90_v43 = vld [vmem:[#allocation2 + $0xc8] sm:$0xff]  ;;  %v75_v44 = vld [vmem:[#allocation2 + $0x50] sm:$0xff]  ;;  %v76_v46 = vld [vmem:[#allocation2 + $0x58] sm:$0xff] }
  0x43   :  { %1129 = vmatprep.subr.bf16.mxu0 %v1128_v13  ;;  %1151 = vmatprep.subr.bf16.mxu1 %v1128_v13  ;;  %v91_v45 = vld [vmem:[#allocation2 + $0xd0] sm:$0xff]  ;;  %v92_v47 = vld [vmem:[#allocation2 + $0xd8] sm:$0xff]  ;;  %v77_v48 = vld [vmem:[#allocation2 + $0x60] sm:$0xff] }
  0x44   :  { %v93_v49 = vld [vmem:[#allocation2 + $0xe0] sm:$0xff]  ;;  %v78_v50 = vld [vmem:[#allocation2 + $0x68] sm:$0xff]  ;;  %v79_v52 = vld [vmem:[#allocation2 + $0x70] sm:$0xff] }
  0x45   :  { %v94_v51 = vld [vmem:[#allocation2 + $0xe8] sm:$0xff]  ;;  %v95_v53 = vld [vmem:[#allocation2 + $0xf0] sm:$0xff]  ;;  %v80_v54 = vld [vmem:[#allocation2 + $0x78] sm:$0xff] }
  0x46   :  { %1131 = vmatpush3.bf16.msra.mxu0 %v1128_v13  ;;  %1159 = vmatpush3.bf16.msra.mxu1 %v1128_v13  ;;  %v96_v55 = vld [vmem:[#allocation2 + $0xf8] sm:$0xff]  ;;  %v1424_v56 = vld [vmem:[%s1955_s2] ss:$0 sm:$0xff]  ;;  %v346_v58 = vld [vmem:[#allocation7 + $0x8] sm:$0xff] }
  0x47   :  { %1133 = vmatprep.subr.bf16.mxu0 %v1132_v16  ;;  %1152 = vmatprep.subr.bf16.mxu1 %v1132_v16  ;;  %v362_v60 = vld [vmem:[#allocation7 + $0x88] sm:$0xff]  ;;  %v345_v4 = vld [vmem:[#allocation7] sm:$0xff]  ;;  %v348_v18 = vld [vmem:[#allocation7 + $0x18] sm:$0xff] }
  0x48   :  { %v361_v12 = vld [vmem:[#allocation7 + $0x80] sm:$0xff] }
  0x4a   :  { %1135 = vmatpush3.bf16.msra.mxu0 %v1132_v16  ;;  %1160 = vmatpush3.bf16.msra.mxu1 %v1132_v16 }
  0x4b   :  { %1137 = vmatprep.subr.bf16.mxu0 %v1136_v19  ;;  %1153 = vmatprep.subr.bf16.mxu1 %v1136_v19 }
  0x4e   :  { %1139 = vmatpush3.bf16.msra.mxu0 %v1136_v19  ;;  %1161 = vmatpush3.bf16.msra.mxu1 %v1136_v19 }
  0x4f   :  { %1141 = vmatprep.subr.bf16.mxu0 %v1140_v22  ;;  %1154 = vmatprep.subr.bf16.mxu1 %v1140_v22 }
  0x52   :  { %1143 = vmatpush3.bf16.msra.mxu0 %v1140_v22  ;;  %1162 = vmatpush3.bf16.msra.mxu1 %v1140_v22 }
  0x53   :  { %1145 = vmatprep.subr.bf16.mxu0 %v1144_v25  ;;  %1155 = vmatprep.subr.bf16.mxu1 %v1144_v25 }
  0x56   :  { %1147 = vmatpush3.bf16.msra.mxu0 %v1144_v25  ;;  %1163 = vmatpush3.bf16.msra.mxu1 %v1144_v25 }
  0x59   :  { %1069 = vmatmul.mubr.f32.vlgmr.msra.gmra.mrb[0].mxu0 %v66_v26  ;;  %1093 = vmatmul.mubr.f32.vlgmr.msra.gmra.mrb[0].mxu1 %v82_v27  ;;  %v364_v27 = vld [vmem:[#allocation7 + $0x98] sm:$0xff] }
  0x5a   :  { %1071 = vmatprep.mubr.f32.mxu0 %v67_v28  ;;  %1095 = vmatprep.mubr.f32.mxu1 %v83_v29 }
  0x5d   :  { %1072 = vmatmul.mubr.f32.gmra.mrb[2].mxu0 %v68_v30  ;;  %1096 = vmatmul.mubr.f32.gmra.mrb[2].mxu1 %v84_v31 }
  0x5e   :  { %1074 = vmatprep.mubr.f32.mxu0 %v69_v32  ;;  %1098 = vmatprep.mubr.f32.mxu1 %v85_v33 }
  0x61   :  { %1075 = vmatmul.mubr.f32.gmra.mrb[4].mxu0 %v70_v34  ;;  %1099 = vmatmul.mubr.f32.gmra.mrb[4].mxu1 %v86_v35 }
  0x62   :  { %1077 = vmatprep.mubr.f32.mxu0 %v71_v36  ;;  %1101 = vmatprep.mubr.f32.mxu1 %v87_v37 }
  0x65   :  { %1078 = vmatmul.mubr.f32.gmra.mrb[6].mxu0 %v72_v38  ;;  %1102 = vmatmul.mubr.f32.gmra.mrb[6].mxu1 %v88_v39 }
  0x66   :  { %1080 = vmatprep.mubr.f32.mxu0 %v73_v40  ;;  %1104 = vmatprep.mubr.f32.mxu1 %v89_v41  ;;  %v347_v41 = vld [vmem:[#allocation7 + $0x10] sm:$0xff] }
  0x69   :  { %1081 = vmatmul.mubr.f32.gmra.mrb[8].mxu0 %v74_v42  ;;  %1105 = vmatmul.mubr.f32.gmra.mrb[8].mxu1 %v90_v43  ;;  %v363_v42 = vld [vmem:[#allocation7 + $0x90] sm:$0xff] }
  0x6a   :  { %1083 = vmatprep.mubr.f32.mxu0 %v75_v44  ;;  %1107 = vmatprep.mubr.f32.mxu1 %v91_v45 }
  0x6d   :  { %1084 = vmatmul.mubr.f32.gmra.mrb[10].mxu0 %v76_v46  ;;  %1108 = vmatmul.mubr.f32.gmra.mrb[10].mxu1 %v92_v47 }
  0x6e   :  { %1086 = vmatprep.mubr.f32.mxu0 %v77_v48  ;;  %1110 = vmatprep.mubr.f32.mxu1 %v93_v49 }
  0x71   :  { %1087 = vmatmul.mubr.f32.gmra.mrb[12].mxu0 %v78_v50  ;;  %1111 = vmatmul.mubr.f32.gmra.mrb[12].mxu1 %v94_v51 }
  0x72   :  { %1089 = vmatprep.mubr.f32.mxu0 %v79_v52  ;;  %1113 = vmatprep.mubr.f32.mxu1 %v95_v53 }
  0x75   :  { %1090 = vmatmul.mubr.f32.gmra.mrb[14].mxu0 %v80_v54  ;;  %1114 = vmatmul.mubr.f32.gmra.mrb[14].mxu1 %v96_v55 }
 0x12c   :  { %v1070_v57 = vpop.f32.mrb[0].mxu0  ;;  %v1094_v59 = vpop.f32.mrb[0].mxu1 }
 0x12d   :  { %v192_v61 = vadd.f32 %v1070_v57, %v1424_v56  ;;  %v272_v62 = vadd.f32 %v1094_v59, %v1424_v56  ;;  %v186_v63 = vpop.f32.mrb[1].mxu0  ;;  %v266_v0 = vpop.f32.mrb[1].mxu1 }
 0x12e   :  { %v187_v3 = vadd.f32 %v1424_v56, %v186_v63  ;;  %v267_v10 = vadd.f32 %v1424_v56, %v266_v0 }
 0x12f   :  { %v1428_v1 = vadd.f32 %v346_v58, %v192_v61  ;;  %v1430_v2 = vadd.f32 %v362_v60, %v272_v62 }
 0x130   :  { %v1073_v5 = vpop.f32.mrb[2].mxu0  ;;  %v1097_v6 = vpop.f32.mrb[2].mxu1  ;;  %v1435_v9 = vadd.f32 %v345_v4, %v187_v3  ;;  %v1448_v19 = vadd.f32 %v361_v12, %v267_v10  ;;  %v350_v10 = vld [vmem:[#allocation7 + $0x28] sm:$0xff] }
 0x131   :  { %443 = vadd.xlane.f32.xlu1 %v1430_v2  ;;  %411 = vadd.xlane.f32.xlu0 %v1428_v1  ;;  %v196_v7 = vpop.f32.mrb[3].mxu0  ;;  %v276_v8 = vpop.f32.mrb[3].mxu1  ;;  %v474_v11 = vmul.f32 %v1428_v1, %v1428_v1  ;;  %v202_v15 = vadd.f32 %v1073_v5, %v1424_v56  ;;  %v490_v20 = vmul.f32 %v1430_v2, %v1430_v2 }
 0x132   :  { %v282_v24 = vadd.f32 %v1097_v6, %v1424_v56  ;;  %v473_v28 = vmul.f32 %v1435_v9, %v1435_v9  ;;  %v197_v37 = vadd.f32 %v1424_v56, %v196_v7  ;;  %v277_v38 = vadd.f32 %v1424_v56, %v276_v8 }
 0x133   :  { %v1456_v23 = vadd.f32 %v348_v18, %v202_v15  ;;  %v489_v39 = vmul.f32 %v1448_v19, %v1448_v19 }
 0x134   :  { %v1440_v13 = vpop.f32.mrb[4].mxu0  ;;  %v1442_v14 = vpop.f32.mrb[4].mxu1  ;;  %v1466_v31 = vadd.f32 %v364_v27, %v282_v24  ;;  %v1495_v50 = vadd.f32 %v347_v41, %v197_v37  ;;  %v1497_v51 = vadd.f32 %v363_v42, %v277_v38  ;;  %v351_v41 = vld [vmem:[#allocation7 + $0x30] sm:$0xff] }
 0x135   :  { %507 = vadd.xlane.f32.xlu1 %v474_v11  ;;  %409 = vadd.xlane.f32.xlu0 %v1435_v9  ;;  %v206_v16 = vpop.f32.mrb[5].mxu0  ;;  %v1446_v17 = vpop.f32.mrb[5].mxu1  ;;  %v476_v61 = vmul.f32 %v1456_v23, %v1456_v23  ;;  %v212_v4 = vadd.f32 %v1440_v13, %v1424_v56  ;;  %v349_v11 = vld [vmem:[#allocation7 + $0x20] sm:$0xff] }
 0x136   :  { %v475_v62 = vmul.f32 %v1495_v50, %v1495_v50  ;;  %v207_v5 = vadd.f32 %v1424_v56, %v206_v16  ;;  %v492_v18 = vmul.f32 %v1466_v31, %v1466_v31  ;;  %v491_v13 = vmul.f32 %v1497_v51, %v1497_v51 }
 0x137   :  { %v1541_v24 = vadd.f32 %v350_v10, %v212_v4  ;;  %v370_v4 = vld [vmem:[#allocation7 + $0xc8] sm:$0xff]  ;;  %v355_v10 = vld [vmem:[#allocation7 + $0x50] sm:$0xff] }
 0x138   :  { %v1452_v21 = vpop.f32.mrb[6].mxu0  ;;  %v1454_v22 = vpop.f32.mrb[6].mxu1  ;;  %v1543_v27 = vadd.f32 %v349_v11, %v207_v5  ;;  %v369_v5 = vld [vmem:[#allocation7 + $0xc0] sm:$0xff] }
 0x139   :  { %539 = vadd.xlane.f32.xlu1 %v490_v20  ;;  %441 = vadd.xlane.f32.xlu0 %v1448_v19  ;;  %v1460_v25 = vpop.f32.mrb[7].mxu0  ;;  %v1462_v26 = vpop.f32.mrb[7].mxu1  ;;  %v292_v20 = vadd.f32 %v1442_v14, %v1424_v56  ;;  %v478_v14 = vmul.f32 %v1541_v24, %v1541_v24  ;;  %v222_v37 = vadd.f32 %v1452_v21, %v1424_v56 }
 0x13a   :  { %v217_v38 = vadd.f32 %v1424_v56, %v1460_v25  ;;  %v297_v21 = vadd.f32 %v1424_v56, %v1462_v26  ;;  %v368_v25 = vld [vmem:[#allocation7 + $0xb8] sm:$0xff]  ;;  %v354_v26 = vld [vmem:[#allocation7 + $0x48] sm:$0xff] }
 0x13c   :  { %v1082_v29 = vpop.f32.mrb[8].mxu0  ;;  %v1106_v30 = vpop.f32.mrb[8].mxu1 }
 0x13d   :  { %415 = vadd.xlane.f32.xlu1 %v1456_v23  ;;  %505 = vadd.xlane.f32.xlu0 %v473_v28  ;;  %v1470_v32 = vadd.f32 %v1082_v29, %v1424_v56  ;;  %v226_v33 = vpop.f32.mrb[9].mxu0  ;;  %v306_v34 = vpop.f32.mrb[9].mxu1  ;;  %v1476_v36 = vadd.f32 %v1106_v30, %v1424_v56  ;;  %v287_v28 = vadd.f32 %v1424_v56, %v1446_v17  ;;  %v366_v29 = vld [vmem:[#allocation7 + $0xa8] sm:$0xff]  ;;  %v365_v30 = vld [vmem:[#allocation7 + $0xa0] sm:$0xff] }
 0x13e   :  { %v1473_v35 = vadd.f32 %v1424_v56, %v226_v33  ;;  %v1483_v40 = vadd.f32 %v1424_v56, %v306_v34  ;;  %v1547_v33 = vadd.f32 %v366_v29, %v292_v20  ;;  %v477_v17 = vmul.f32 %v1543_v27, %v1543_v27  ;;  %v372_v20 = vld [vmem:[#allocation7 + $0xd8] sm:$0xff] }
 0x13f   :  { %v1549_v34 = vadd.f32 %v365_v30, %v287_v28  ;;  %v371_v28 = vld [vmem:[#allocation7 + $0xd0] sm:$0xff] }
 0x140   :  { %v1085_v43 = vpop.f32.mrb[10].mxu0  ;;  %v1109_v44 = vpop.f32.mrb[10].mxu1  ;;  %v494_v42 = vmul.f32 %v1547_v33, %v1547_v33 }
 0x141   :  { %447 = vadd.xlane.f32.xlu1 %v1466_v31  ;;  %537 = vadd.xlane.f32.xlu0 %v489_v39  ;;  %v1487_v45 = vadd.f32 %v1085_v43, %v1424_v56  ;;  %v236_v46 = vpop.f32.mrb[11].mxu0  ;;  %v316_v47 = vpop.f32.mrb[11].mxu1  ;;  %v1493_v49 = vadd.f32 %v1109_v44, %v1424_v56  ;;  %v352_v39 = vld [vmem:[#allocation7 + $0x38] sm:$0xff]  ;;  %v493_v43 = vmul.f32 %v1549_v34, %v1549_v34 }
 0x142   :  { %v1490_v48 = vadd.f32 %v1424_v56, %v236_v46  ;;  %v1500_v52 = vadd.f32 %v1424_v56, %v316_v47  ;;  %v302_v44 = vadd.f32 %v1454_v22, %v1424_v56  ;;  %v1569_v46 = vadd.f32 %v352_v39, %v222_v37  ;;  %v374_v39 = vld [vmem:[#allocation7 + $0xe8] sm:$0xff] }
 0x143   :  { %v1571_v47 = vadd.f32 %v351_v41, %v217_v38  ;;  %v1622_v29 = vadd.f32 %v372_v20, %v1493_v49  ;;  %v358_v49 = vld [vmem:[#allocation7 + $0x68] sm:$0xff]  ;;  %v373_v41 = vld [vmem:[#allocation7 + $0xe0] sm:$0xff] }
 0x144   :  { %v1088_v53 = vpop.f32.mrb[12].mxu0  ;;  %v1112_v54 = vpop.f32.mrb[12].mxu1  ;;  %v480_v22 = vmul.f32 %v1569_v46, %v1569_v46  ;;  %v1625_v30 = vadd.f32 %v371_v28, %v1500_v52 }
 0x145   :  { %413 = vadd.xlane.f32.xlu1 %v1495_v50  ;;  %445 = vadd.xlane.f32.xlu0 %v1497_v51  ;;  %v1505_v55 = vadd.f32 %v1088_v53, %v1424_v56  ;;  %v246_v57 = vpop.f32.mrb[13].mxu0  ;;  %v326_v58 = vpop.f32.mrb[13].mxu1  ;;  %v1511_v60 = vadd.f32 %v1112_v54, %v1424_v56  ;;  %v367_v53 = vld [vmem:[#allocation7 + $0xb0] sm:$0xff]  ;;  %v1575_v54 = vadd.f32 %v368_v25, %v302_v44 }
 0x146   :  { %v1508_v59 = vadd.f32 %v1424_v56, %v246_v57  ;;  %v1518_v63 = vadd.f32 %v1424_v56, %v326_v58  ;;  %v1577_v57 = vadd.f32 %v367_v53, %v297_v21  ;;  %v353_v58 = vld [vmem:[#allocation7 + $0x40] sm:$0xff]  ;;  %v500_v52 = vmul.f32 %v1622_v29, %v1622_v29  ;;  %v359_v44 = vld [vmem:[#allocation7 + $0x70] sm:$0xff] }
 0x147   :  { %v1640_v37 = vadd.f32 %v358_v49, %v1505_v55 }
 0x148   :  { %v1091_v0 = vpop.f32.mrb[14].mxu0  ;;  %v1115_v3 = vpop.f32.mrb[14].mxu1 }
 0x149   :  { %511 = vadd.xlane.f32.xlu1 %v476_v61  ;;  %509 = vadd.xlane.f32.xlu0 %v475_v62  ;;  %v1524_v6 = vadd.f32 %v1091_v0, %v1424_v56  ;;  %v256_v7 = vpop.f32.mrb[15].mxu0  ;;  %v336_v8 = vpop.f32.mrb[15].mxu1  ;;  %v1530_v15 = vadd.f32 %v1115_v3, %v1424_v56  ;;  %v496_v61 = vmul.f32 %v1575_v54, %v1575_v54 }
 0x14a   :  { %v1527_v12 = vadd.f32 %v1424_v56, %v256_v7  ;;  %v1537_v16 = vadd.f32 %v1424_v56, %v336_v8  ;;  %v479_v56 = vmul.f32 %v1571_v47, %v1571_v47  ;;  %v495_v62 = vmul.f32 %v1577_v57, %v1577_v57 }
 0x14b   :  { %v1592_v0 = vadd.f32 %v354_v26, %v1470_v32  ;;  %v1595_v3 = vadd.f32 %v353_v58, %v1473_v35  ;;  %v1598_v7 = vadd.f32 %v370_v4, %v1476_v36  ;;  %v1601_v8 = vadd.f32 %v369_v5, %v1483_v40  ;;  %v356_v36 = vld [vmem:[#allocation7 + $0x58] sm:$0xff] }
 0x14c   :  { %v486_v55 = vmul.f32 %v1640_v37, %v1640_v37  ;;  %v1667_v53 = vadd.f32 %v359_v44, %v1527_v12 }
 0x14d   :  { %543 = vadd.xlane.f32.xlu1 %v492_v18  ;;  %541 = vadd.xlane.f32.xlu0 %v491_v13  ;;  %v482_v32 = vmul.f32 %v1592_v0, %v1592_v0  ;;  %v481_v35 = vmul.f32 %v1595_v3, %v1595_v3  ;;  %v498_v40 = vmul.f32 %v1598_v7, %v1598_v7 }
 0x14e   :  { %v497_v11 = vmul.f32 %v1601_v8, %v1601_v8  ;;  %v1616_v18 = vadd.f32 %v356_v36, %v1487_v45  ;;  %v1619_v13 = vadd.f32 %v355_v10, %v1490_v48  ;;  %v487_v12 = vmul.f32 %v1667_v53, %v1667_v53 }
 0x150   :  { %v484_v45 = vmul.f32 %v1616_v18, %v1616_v18  ;;  %v483_v48 = vmul.f32 %v1619_v13, %v1619_v13 }
 0x151   :  { %419 = vadd.xlane.f32.xlu1 %v1541_v24  ;;  %417 = vadd.xlane.f32.xlu0 %v1543_v27 }
 0x155   :  { %451 = vadd.xlane.f32.xlu1 %v1547_v33  ;;  %449 = vadd.xlane.f32.xlu0 %v1549_v34 }
 0x159   :  { %515 = vadd.xlane.f32.xlu1 %v478_v14  ;;  %513 = vadd.xlane.f32.xlu0 %v477_v17  ;;  %v357_v14 = vld [vmem:[#allocation7 + $0x60] sm:$0xff]  ;;  %v499_v17 = vmul.f32 %v1625_v30, %v1625_v30 }
 0x15a   :  { %v1643_v38 = vadd.f32 %v357_v14, %v1508_v59 }
 0x15c   :  { %v485_v59 = vmul.f32 %v1643_v38, %v1643_v38 }
 0x15d   :  { %547 = vadd.xlane.f32.xlu1 %v494_v42  ;;  %545 = vadd.xlane.f32.xlu0 %v493_v43  ;;  %v1646_v42 = vadd.f32 %v374_v39, %v1511_v60  ;;  %v1649_v43 = vadd.f32 %v373_v41, %v1518_v63  ;;  %v360_v60 = vld [vmem:[#allocation7 + $0x78] sm:$0xff] }
 0x15e   :  { %v1664_v25 = vadd.f32 %v360_v60, %v1524_v6 }
 0x15f   :  { %v502_v63 = vmul.f32 %v1646_v42, %v1646_v42  ;;  %v501_v21 = vmul.f32 %v1649_v43, %v1649_v43 }
 0x160   :  { %v488_v6 = vmul.f32 %v1664_v25, %v1664_v25 }
 0x161   :  { %423 = vadd.xlane.f32.xlu1 %v1569_v46  ;;  %421 = vadd.xlane.f32.xlu0 %v1571_v47 }
 0x165   :  { %455 = vadd.xlane.f32.xlu1 %v1575_v54  ;;  %453 = vadd.xlane.f32.xlu0 %v1577_v57 }
 0x169   :  { %519 = vadd.xlane.f32.xlu1 %v480_v22  ;;  %517 = vadd.xlane.f32.xlu0 %v479_v56  ;;  %v376_v22 = vld [vmem:[#allocation7 + $0xf8] sm:$0xff]  ;;  %v375_v56 = vld [vmem:[#allocation7 + $0xf0] sm:$0xff] }
 0x16a   :  { %v1670_v26 = vadd.f32 %v376_v22, %v1530_v15  ;;  %v1673_v58 = vadd.f32 %v375_v56, %v1537_v16 }
 0x16c   :  { %v504_v15 = vmul.f32 %v1670_v26, %v1670_v26  ;;  %v503_v16 = vmul.f32 %v1673_v58, %v1673_v58 }
 0x16d   :  { %551 = vadd.xlane.f32.xlu1 %v496_v61  ;;  %549 = vadd.xlane.f32.xlu0 %v495_v62 }
 0x171   :  { %427 = vadd.xlane.f32.xlu1 %v1592_v0  ;;  %425 = vadd.xlane.f32.xlu0 %v1595_v3 }
 0x175   :  { %459 = vadd.xlane.f32.xlu1 %v1598_v7  ;;  %457 = vadd.xlane.f32.xlu0 %v1601_v8 }
 0x179   :  { %523 = vadd.xlane.f32.xlu1 %v482_v32  ;;  %521 = vadd.xlane.f32.xlu0 %v481_v35 }
 0x17d   :  { %555 = vadd.xlane.f32.xlu1 %v498_v40  ;;  %553 = vadd.xlane.f32.xlu0 %v497_v11 }
 0x181   :  { %431 = vadd.xlane.f32.xlu1 %v1616_v18  ;;  %429 = vadd.xlane.f32.xlu0 %v1619_v13 }
 0x185   :  { %463 = vadd.xlane.f32.xlu1 %v1622_v29  ;;  %461 = vadd.xlane.f32.xlu0 %v1625_v30 }
 0x189   :  { %527 = vadd.xlane.f32.xlu1 %v484_v45  ;;  %525 = vadd.xlane.f32.xlu0 %v483_v48 }
 0x18d   :  { %559 = vadd.xlane.f32.xlu1 %v500_v52  ;;  %557 = vadd.xlane.f32.xlu0 %v499_v17 }
 0x191   :  { %435 = vadd.xlane.f32.xlu1 %v1640_v37  ;;  %433 = vadd.xlane.f32.xlu0 %v1643_v38 }
 0x195   :  { %467 = vadd.xlane.f32.xlu1 %v1646_v42  ;;  %465 = vadd.xlane.f32.xlu0 %v1649_v43 }
 0x199   :  { %531 = vadd.xlane.f32.xlu1 %v486_v55  ;;  %529 = vadd.xlane.f32.xlu0 %v485_v59 }
 0x19d   :  { %563 = vadd.xlane.f32.xlu1 %v502_v63  ;;  %561 = vadd.xlane.f32.xlu0 %v501_v21 }
 0x1a1   :  { %439 = vadd.xlane.f32.xlu1 %v1664_v25  ;;  %437 = vadd.xlane.f32.xlu0 %v1667_v53 }
 0x1a5   :  { %471 = vadd.xlane.f32.xlu1 %v1670_v26  ;;  %469 = vadd.xlane.f32.xlu0 %v1673_v58 }
 0x1a9   :  { %535 = vadd.xlane.f32.xlu1 %v488_v6  ;;  %533 = vadd.xlane.f32.xlu0 %v487_v12 }
 0x1ad   :  { %567 = vadd.xlane.f32.xlu1 %v504_v15  ;;  %565 = vadd.xlane.f32.xlu0 %v503_v16 }
 0x1be   :  { %v444_v61 = vpop.xlane.xlu1 %443  ;;  %v412_v62 = vpop.xlane.xlu0 %411 }
 0x1bf   :  { %v570_v4 = vmul.f32 0.03125, %v412_v62  ;;  %v586_v35 = vmul.f32 0.03125, %v444_v61 }
 0x1c1   :  { %v634_v36 = vmul.f32 %v570_v4, %v570_v4  ;;  %v650_v45 = vmul.f32 %v586_v35, %v586_v35 }
 0x1c2   :  { %v508_v5 = vpop.xlane.xlu1 %507  ;;  %v410_v32 = vpop.xlane.xlu0 %409 }
 0x1c3   :  { %v602_v10 = vmul.f32 0.03125, %v508_v5  ;;  %v1687_v11 = vmul.f32 0.03125, %v410_v32 }
 0x1c5   :  { %v666_v40 = vsub.f32 %v602_v10, %v634_v36  ;;  %v633_v17 = vmul.f32 %v1687_v11, %v1687_v11  ;;  %v730_v10 = vsub.f32 %v1428_v1, %v570_v4  ;;  %v1714_v1 = vld [vmem:[%s1958_s5] ss:$0 sm:$0xff] }
 0x1c6   :  { %v540_v20 = vpop.xlane.xlu1 %539  ;;  %v442_v28 = vpop.xlane.xlu0 %441 }
 0x1c7   :  { %v698_v48 = vmax.f32 %v666_v40, 0.0  ;;  %v618_v49 = vmul.f32 0.03125, %v540_v20  ;;  %v1691_v59 = vmul.f32 0.03125, %v442_v28  ;;  %v1703_v20 = vld [vmem:[%s1957_s4] ss:$0 sm:$0xff]  ;;  %s1333_s4 = smov [#allocation8]  }
 0x1c8   :  { %s972_s5 = sshll.u32 %s1333_s4, 4  ;;  %s973_s5 = int_to_ptr.vmem [resolvable:$true] %s972_s5 }
 0x1c9   :  { %v762_v14 = vadd.f32 1e-12, %v698_v48  ;;  %v682_v52 = vsub.f32 %v618_v49, %v650_v45  ;;  %v649_v56 = vmul.f32 %v1691_v59, %v1691_v59  ;;  %s1300_s15 = scalar_lea.vmem %s973_s5, 4096  ;;  %p1305_p11 = scmp.lt.s32.totalorder %s973_s5, %s973_s5 }
 0x1ca   :  { %v416_v39 = vpop.xlane.xlu1 %415  ;;  %v506_v41 = vpop.xlane.xlu0 %505  ;;  %p1301_p10 = scmp.ne.s32.totalorder %s973_s5, %s1300_s15  ;;  %p1306_p12 = scmp.lt.s32.totalorder %s1300_s15, %s1300_s15 }
 0x1cb   :  { %1170 = vrsqrt.f32 %v762_v14  ;;  %v714_v55 = vmax.f32 %v682_v52, 0.0  ;;  %v601_v60 = vmul.f32 0.03125, %v506_v41  ;;  %v1695_v61 = vmul.f32 0.03125, %v416_v39 }
 0x1cc   :  { %p1307_p13 = por %p1306_p12, %p1305_p11 }
 0x1cd   :  { %v778_v44 = vadd.f32 1e-12, %v714_v55  ;;  %v665_v63 = vsub.f32 %v601_v60, %v633_v17  ;;  %v636_v48 = vmul.f32 %v1695_v61, %v1695_v61  ;;  %v746_v55 = vsub.f32 %v1430_v2, %v586_v35 }
 0x1ce   :  { %v448_v21 = vpop.xlane.xlu1 %447  ;;  %v538_v22 = vpop.xlane.xlu0 %537  ;;  %v729_v35 = vsub.f32 %v1435_v9, %v1687_v11  ;;  %p1308_p0 = pnand %p1307_p13, %p1301_p10 }
 0x1cf   :  { %1172 = vrsqrt.f32 %v778_v44  ;;  %v697_v6 = vmax.f32 %v665_v63, 0.0  ;;  %v617_v12 = vmul.f32 0.03125, %v538_v22  ;;  %v1707_v49 = vmul.f32 0.03125, %v448_v21 }
 0x1d1   :  { %v761_v15 = vadd.f32 1e-12, %v697_v6  ;;  %v681_v16 = vsub.f32 %v617_v12, %v649_v56  ;;  %v652_v6 = vmul.f32 %v1707_v49, %v1707_v49 }
 0x1d2   :  { %v414_v62 = vpop.xlane.xlu1 %413  ;;  %v446_v5 = vpop.xlane.xlu0 %445 }
 0x1d3   :  { %1174 = vrsqrt.f32 %v761_v15  ;;  %v713_v32 = vmax.f32 %v681_v16, 0.0  ;;  %v1697_v36 = vmul.f32 0.03125, %v414_v62  ;;  %v1709_v14 = vmul.f32 0.03125, %v446_v5 }
 0x1d5   :  { %v1171_v40 = vpop.eup %1170  ;;  %v777_v28 = vadd.f32 1e-12, %v713_v32  ;;  %v635_v4 = vmul.f32 %v1697_v36, %v1697_v36  ;;  %v651_v12 = vmul.f32 %v1709_v14, %v1709_v14 }
 0x1d6   :  { %v826_v45 = vmul.f32 %v1171_v40, %v730_v10  ;;  %v512_v52 = vpop.xlane.xlu1 %511  ;;  %v510_v17 = vpop.xlane.xlu0 %509 }
 0x1d7   :  { %1176 = vrsqrt.f32 %v777_v28  ;;  %v604_v39 = vmul.f32 0.03125, %v512_v52  ;;  %v603_v41 = vmul.f32 0.03125, %v510_v17 }
 0x1d8   :  { %v865_v60 = vmul.f32 %v1703_v20, %v826_v45 }
 0x1d9   :  { %v1173_v44 = vpop.eup %1172  ;;  %v668_v63 = vsub.f32 %v604_v39, %v636_v48  ;;  %v667_v21 = vsub.f32 %v603_v41, %v635_v4 }
 0x1da   :  { %v904_v22 = vadd.f32 %v1714_v1, %v865_v60  ;;  %v842_v56 = vmul.f32 %v1173_v44, %v746_v55  ;;  %v544_v15 = vpop.xlane.xlu1 %543  ;;  %v542_v16 = vpop.xlane.xlu0 %541  ;;  %v745_v44 = vsub.f32 %v1448_v19, %v1691_v59 }
 0x1db   :  { %v700_v62 = vmax.f32 %v668_v63, 0.0  ;;  %v699_v5 = vmax.f32 %v667_v21, 0.0  ;;  %v620_v32 = vmul.f32 0.03125, %v544_v15  ;;  %v619_v2 = vmul.f32 0.03125, %v542_v16 }
 0x1dc   :  { %936 = vst [vmem:[#allocation8 + $0x8] sm:$0xff] %v904_v22  ;;  %v881_v10 = vmul.f32 %v1703_v20, %v842_v56 }
 0x1dd   :  { %v1175_v40 = vpop.eup %1174  ;;  %v764_v28 = vadd.f32 1e-12, %v700_v62  ;;  %v763_v45 = vadd.f32 1e-12, %v699_v5  ;;  %v684_v48 = vsub.f32 %v620_v32, %v652_v6  ;;  %v683_v52 = vsub.f32 %v619_v2, %v651_v12 }
 0x1de   :  { %v920_v17 = vadd.f32 %v1714_v1, %v881_v10  ;;  %v825_v4 = vmul.f32 %v1175_v40, %v729_v35  ;;  %v420_v39 = vpop.xlane.xlu1 %419  ;;  %v418_v41 = vpop.xlane.xlu0 %417 }
 0x1df   :  { %1178 = vrsqrt.f32 %v764_v28  ;;  %v716_v55 = vmax.f32 %v684_v48, 0.0  ;;  %v715_v60 = vmax.f32 %v683_v52, 0.0  ;;  %v1733_v15 = vmul.f32 0.03125, %v420_v39 }
 0x1e0   :  { %952 = vst [vmem:[#allocation8 + $0x88] sm:$0xff] %v920_v17  ;;  %v864_v9 = vmul.f32 %v1703_v20, %v825_v4  ;;  %1180 = vrsqrt.f32 %v763_v45  ;;  %v1735_v16 = vmul.f32 0.03125, %v418_v41  ;;  %v732_v28 = vsub.f32 %v1456_v23, %v1695_v61 }
 0x1e1   :  { %v1177_v11 = vpop.eup %1176  ;;  %v780_v63 = vadd.f32 1e-12, %v716_v55  ;;  %v779_v21 = vadd.f32 1e-12, %v715_v60  ;;  %v638_v2 = vmul.f32 %v1733_v15, %v1733_v15  ;;  %v731_v52 = vsub.f32 %v1495_v50, %v1697_v36 }
 0x1e2   :  { %v903_v22 = vadd.f32 %v1714_v1, %v864_v9  ;;  %v841_v56 = vmul.f32 %v1177_v11, %v745_v44  ;;  %v452_v6 = vpop.xlane.xlu1 %451  ;;  %v450_v12 = vpop.xlane.xlu0 %449  ;;  %v637_v35 = vmul.f32 %v1735_v16, %v1735_v16  ;;  %v748_v41 = vsub.f32 %v1466_v31, %v1707_v49 }
 0x1e3   :  { %1182 = vrsqrt.f32 %v780_v63  ;;  %v1739_v59 = vmul.f32 0.03125, %v452_v6  ;;  %v1747_v45 = vmul.f32 0.03125, %v450_v12 }
 0x1e4   :  { %935 = vst [vmem:[#allocation8] sm:$0xff] %v903_v22  ;;  %v880_v62 = vmul.f32 %v1703_v20, %v841_v56  ;;  %1184 = vrsqrt.f32 %v779_v21  ;;  %v747_v21 = vsub.f32 %v1497_v51, %v1709_v14 }
 0x1e5   :  { %v654_v60 = vmul.f32 %v1739_v59, %v1739_v59  ;;  %v653_v36 = vmul.f32 %v1747_v45, %v1747_v45 }
 0x1e6   :  { %v919_v19 = vadd.f32 %v1714_v1, %v880_v62  ;;  %v516_v5 = vpop.xlane.xlu1 %515  ;;  %v514_v32 = vpop.xlane.xlu0 %513 }
 0x1e7   :  { %v606_v10 = vmul.f32 0.03125, %v516_v5  ;;  %v605_v40 = vmul.f32 0.03125, %v514_v32 }
 0x1e8   :  { %951 = vst [vmem:[#allocation8 + $0x80] sm:$0xff] %v919_v19 }
 0x1e9   :  { %v1179_v48 = vpop.eup %1178  ;;  %v670_v17 = vsub.f32 %v606_v10, %v638_v2  ;;  %v669_v4 = vsub.f32 %v605_v40, %v637_v35 }
 0x1ea   :  { %v1181_v39 = vpop.eup %1180  ;;  %v828_v55 = vmul.f32 %v1179_v48, %v732_v28  ;;  %v548_v44 = vpop.xlane.xlu1 %547 }
 0x1eb   :  { %v546_v9 = vpop.xlane.xlu0 %545  ;;  %v827_v23 = vmul.f32 %v1181_v39, %v731_v52  ;;  %v702_v61 = vmax.f32 %v670_v17, 0.0  ;;  %v701_v11 = vmax.f32 %v669_v4, 0.0  ;;  %v622_v63 = vmul.f32 0.03125, %v548_v44 }
 0x1ec   :  { %v867_v50 = vmul.f32 %v1703_v20, %v828_v55  ;;  %v621_v22 = vmul.f32 0.03125, %v546_v9 }
 0x1ed   :  { %v1183_v31 = vpop.eup %1182  ;;  %v866_v49 = vmul.f32 %v1703_v20, %v827_v23  ;;  %v766_v56 = vadd.f32 1e-12, %v702_v61  ;;  %v765_v6 = vadd.f32 1e-12, %v701_v11  ;;  %v686_v12 = vsub.f32 %v622_v63, %v654_v60 }
 0x1ee   :  { %v1185_v62 = vpop.eup %1184  ;;  %v906_v19 = vadd.f32 %v1714_v1, %v867_v50  ;;  %v844_v5 = vmul.f32 %v1183_v31, %v748_v41  ;;  %v685_v32 = vsub.f32 %v621_v22, %v653_v36  ;;  %v424_v2 = vpop.xlane.xlu1 %423  ;;  %v734_v36 = vsub.f32 %v1541_v24, %v1733_v15 }
 0x1ef   :  { %v422_v35 = vpop.xlane.xlu0 %421  ;;  %v905_v51 = vadd.f32 %v1714_v1, %v866_v49  ;;  %v843_v14 = vmul.f32 %v1185_v62, %v747_v21  ;;  %1186 = vrsqrt.f32 %v766_v56  ;;  %v718_v10 = vmax.f32 %v686_v12, 0.0 }
 0x1f0   :  { %938 = vst [vmem:[#allocation8 + $0x18] sm:$0xff] %v906_v19  ;;  %v883_v40 = vmul.f32 %v1703_v20, %v844_v5  ;;  %1188 = vrsqrt.f32 %v765_v6  ;;  %v717_v28 = vmax.f32 %v685_v32, 0.0  ;;  %v1767_v60 = vmul.f32 0.03125, %v424_v2 }
 0x1f1   :  { %937 = vst [vmem:[#allocation8 + $0x10] sm:$0xff] %v905_v51  ;;  %v882_v48 = vmul.f32 %v1703_v20, %v843_v14  ;;  %v782_v52 = vadd.f32 1e-12, %v718_v10  ;;  %v1769_v44 = vmul.f32 0.03125, %v422_v35  ;;  %v733_v49 = vsub.f32 %v1543_v27, %v1735_v16 }
 0x1f2   :  { %v922_v17 = vadd.f32 %v1714_v1, %v883_v40  ;;  %v781_v4 = vadd.f32 1e-12, %v717_v28  ;;  %v456_v39 = vpop.xlane.xlu1 %455  ;;  %v640_v11 = vmul.f32 %v1767_v60, %v1767_v60  ;;  %v750_v62 = vsub.f32 %v1547_v33, %v1739_v59 }
 0x1f3   :  { %v454_v41 = vpop.xlane.xlu0 %453  ;;  %v921_v55 = vadd.f32 %v1714_v1, %v882_v48  ;;  %1190 = vrsqrt.f32 %v782_v52  ;;  %v1771_v9 = vmul.f32 0.03125, %v456_v39  ;;  %v639_v63 = vmul.f32 %v1769_v44, %v1769_v44 }
 0x1f4   :  { %954 = vst [vmem:[#allocation8 + $0x98] sm:$0xff] %v922_v17  ;;  %1192 = vrsqrt.f32 %v781_v4  ;;  %v1779_v22 = vmul.f32 0.03125, %v454_v41  ;;  %v749_v14 = vsub.f32 %v1549_v34, %v1747_v45 }
 0x1f5   :  { %953 = vst [vmem:[#allocation8 + $0x90] sm:$0xff] %v921_v55  ;;  %v656_v5 = vmul.f32 %v1771_v9, %v1771_v9 }
 0x1f6   :  { %v520_v23 = vpop.xlane.xlu1 %519  ;;  %v655_v16 = vmul.f32 %v1779_v22, %v1779_v22 }
 0x1f7   :  { %v518_v61 = vpop.xlane.xlu0 %517  ;;  %v608_v21 = vmul.f32 0.03125, %v520_v23 }
 0x1f8   :  { %v607_v50 = vmul.f32 0.03125, %v518_v61 }
 0x1f9   :  { %v1187_v31 = vpop.eup %1186  ;;  %v672_v56 = vsub.f32 %v608_v21, %v640_v11 }
 0x1fa   :  { %v671_v6 = vsub.f32 %v607_v50, %v639_v63  ;;  %v1189_v12 = vpop.eup %1188  ;;  %v830_v19 = vmul.f32 %v1187_v31, %v734_v36  ;;  %v552_v32 = vpop.xlane.xlu1 %551 }
 0x1fb   :  { %v550_v2 = vpop.xlane.xlu0 %549  ;;  %v829_v35 = vmul.f32 %v1189_v12, %v733_v49  ;;  %v704_v24 = vmax.f32 %v672_v56, 0.0  ;;  %v624_v51 = vmul.f32 0.03125, %v552_v32 }
 0x1fc   :  { %v703_v15 = vmax.f32 %v671_v6, 0.0  ;;  %v869_v27 = vmul.f32 %v1703_v20, %v830_v19  ;;  %v623_v10 = vmul.f32 0.03125, %v550_v2 }
 0x1fd   :  { %v1191_v33 = vpop.eup %1190  ;;  %v868_v59 = vmul.f32 %v1703_v20, %v829_v35  ;;  %v768_v40 = vadd.f32 1e-12, %v704_v24  ;;  %v688_v48 = vsub.f32 %v624_v51, %v656_v5 }
 0x1fe   :  { %v767_v28 = vadd.f32 1e-12, %v703_v15  ;;  %v1193_v52 = vpop.eup %1192  ;;  %v908_v17 = vadd.f32 %v1714_v1, %v869_v27  ;;  %v846_v4 = vmul.f32 %v1191_v33, %v750_v62  ;;  %v687_v39 = vsub.f32 %v623_v10, %v655_v16  ;;  %v428_v41 = vpop.xlane.xlu1 %427 }
 0x1ff   :  { %v426_v55 = vpop.xlane.xlu0 %425  ;;  %v907_v34 = vadd.f32 %v1714_v1, %v868_v59  ;;  %v845_v45 = vmul.f32 %v1193_v52, %v749_v14  ;;  %1194 = vrsqrt.f32 %v768_v40  ;;  %v720_v23 = vmax.f32 %v688_v48, 0.0 }
 0x200   :  { %940 = vst [vmem:[#allocation8 + $0x28] sm:$0xff] %v908_v17  ;;  %v885_v61 = vmul.f32 %v1703_v20, %v846_v4  ;;  %1196 = vrsqrt.f32 %v767_v28  ;;  %v719_v11 = vmax.f32 %v687_v39, 0.0  ;;  %v1799_v6 = vmul.f32 0.03125, %v428_v41 }
 0x201   :  { %939 = vst [vmem:[#allocation8 + $0x20] sm:$0xff] %v907_v34  ;;  %v884_v63 = vmul.f32 %v1703_v20, %v845_v45  ;;  %v784_v21 = vadd.f32 1e-12, %v720_v23  ;;  %v1801_v12 = vmul.f32 0.03125, %v426_v55  ;;  %v736_v15 = vsub.f32 %v1569_v46, %v1767_v60 }
 0x202   :  { %v924_v50 = vadd.f32 %v1714_v1, %v885_v61  ;;  %v783_v36 = vadd.f32 1e-12, %v719_v11  ;;  %v460_v31 = vpop.xlane.xlu1 %459  ;;  %v642_v32 = vmul.f32 %v1799_v6, %v1799_v6  ;;  %v735_v27 = vsub.f32 %v1571_v47, %v1769_v44 }
 0x203   :  { %v458_v49 = vpop.xlane.xlu0 %457  ;;  %v923_v56 = vadd.f32 %v1714_v1, %v884_v63  ;;  %1198 = vrsqrt.f32 %v784_v21  ;;  %v1803_v62 = vmul.f32 0.03125, %v460_v31  ;;  %v641_v2 = vmul.f32 %v1801_v12, %v1801_v12 }
 0x204   :  { %956 = vst [vmem:[#allocation8 + $0xa8] sm:$0xff] %v924_v50  ;;  %1200 = vrsqrt.f32 %v783_v36  ;;  %v1811_v51 = vmul.f32 0.03125, %v458_v49  ;;  %v752_v59 = vsub.f32 %v1575_v54, %v1771_v9  ;;  %v751_v39 = vsub.f32 %v1577_v57, %v1779_v22 }
 0x205   :  { %955 = vst [vmem:[#allocation8 + $0xa0] sm:$0xff] %v923_v56  ;;  %v658_v28 = vmul.f32 %v1803_v62, %v1803_v62 }
 0x206   :  { %v524_v19 = vpop.xlane.xlu1 %523  ;;  %v657_v44 = vmul.f32 %v1811_v51, %v1811_v51 }
 0x207   :  { %v522_v5 = vpop.xlane.xlu0 %521  ;;  %v610_v35 = vmul.f32 0.03125, %v524_v19 }
 0x208   :  { %v609_v24 = vmul.f32 0.03125, %v522_v5 }
 0x209   :  { %v1195_v14 = vpop.eup %1194  ;;  %v674_v16 = vsub.f32 %v610_v35, %v642_v32 }
 0x20a   :  { %v673_v10 = vsub.f32 %v609_v24, %v641_v2  ;;  %v1197_v33 = vpop.eup %1196  ;;  %v832_v40 = vmul.f32 %v1195_v14, %v736_v15  ;;  %v556_v48 = vpop.xlane.xlu1 %555 }
 0x20b   :  { %v554_v52 = vpop.xlane.xlu0 %553  ;;  %v831_v17 = vmul.f32 %v1197_v33, %v735_v27  ;;  %v706_v46 = vmax.f32 %v674_v16, 0.0  ;;  %v626_v4 = vmul.f32 0.03125, %v556_v48  ;;  %v738_v48 = vsub.f32 %v1592_v0, %v1799_v6 }
 0x20c   :  { %v705_v60 = vmax.f32 %v673_v10, 0.0  ;;  %v871_v47 = vmul.f32 %v1703_v20, %v832_v40  ;;  %v625_v41 = vmul.f32 0.03125, %v554_v52 }
 0x20d   :  { %v1199_v54 = vpop.eup %1198  ;;  %v870_v9 = vmul.f32 %v1703_v20, %v831_v17  ;;  %v770_v55 = vadd.f32 1e-12, %v706_v46  ;;  %v690_v45 = vsub.f32 %v626_v4, %v658_v28  ;;  %v737_v46 = vsub.f32 %v1595_v3, %v1801_v12 }
 0x20e   :  { %v769_v34 = vadd.f32 1e-12, %v705_v60  ;;  %v1201_v23 = vpop.eup %1200  ;;  %v910_v61 = vadd.f32 %v1714_v1, %v871_v47  ;;  %v848_v11 = vmul.f32 %v1199_v54, %v752_v59  ;;  %v689_v63 = vsub.f32 %v625_v41, %v657_v44  ;;  %v432_v21 = vpop.xlane.xlu1 %431 }
 0x20f   :  { %v430_v50 = vpop.xlane.xlu0 %429  ;;  %v909_v57 = vadd.f32 %v1714_v1, %v870_v9  ;;  %v847_v22 = vmul.f32 %v1201_v23, %v751_v39  ;;  %1202 = vrsqrt.f32 %v770_v55  ;;  %v722_v36 = vmax.f32 %v690_v45, 0.0 }
 0x210   :  { %942 = vst [vmem:[#allocation8 + $0x38] sm:$0xff] %v910_v61  ;;  %v887_v31 = vmul.f32 %v1703_v20, %v848_v11  ;;  %1204 = vrsqrt.f32 %v769_v34  ;;  %v721_v49 = vmax.f32 %v689_v63, 0.0  ;;  %v1831_v15 = vmul.f32 0.03125, %v432_v21 }
 0x211   :  { %941 = vst [vmem:[#allocation8 + $0x30] sm:$0xff] %v909_v57  ;;  %v886_v56 = vmul.f32 %v1703_v20, %v847_v22  ;;  %v786_v19 = vadd.f32 1e-12, %v722_v36  ;;  %v1833_v14 = vmul.f32 0.03125, %v430_v50  ;;  %v754_v47 = vsub.f32 %v1598_v7, %v1803_v62 }
 0x212   :  { %v926_v5 = vadd.f32 %v1714_v1, %v887_v31  ;;  %v785_v32 = vadd.f32 1e-12, %v721_v49  ;;  %v464_v2 = vpop.xlane.xlu1 %463  ;;  %v644_v33 = vmul.f32 %v1831_v15, %v1831_v15  ;;  %v753_v45 = vsub.f32 %v1601_v8, %v1811_v51 }
 0x213   :  { %v462_v35 = vpop.xlane.xlu0 %461  ;;  %v925_v24 = vadd.f32 %v1714_v1, %v886_v56  ;;  %1206 = vrsqrt.f32 %v786_v19  ;;  %v1835_v27 = vmul.f32 0.03125, %v464_v2  ;;  %v643_v59 = vmul.f32 %v1833_v14, %v1833_v14 }
 0x214   :  { %958 = vst [vmem:[#allocation8 + $0xb8] sm:$0xff] %v926_v5  ;;  %1208 = vrsqrt.f32 %v785_v32  ;;  %v1843_v52 = vmul.f32 0.03125, %v462_v35 }
 0x215   :  { %957 = vst [vmem:[#allocation8 + $0xb0] sm:$0xff] %v925_v24  ;;  %v660_v41 = vmul.f32 %v1835_v27, %v1835_v27 }
 0x216   :  { %v528_v16 = vpop.xlane.xlu1 %527  ;;  %v659_v12 = vmul.f32 %v1843_v52, %v1843_v52 }
 0x217   :  { %v526_v10 = vpop.xlane.xlu0 %525  ;;  %v612_v40 = vmul.f32 0.03125, %v528_v16 }
 0x218   :  { %v611_v28 = vmul.f32 0.03125, %v526_v10 }
 0x219   :  { %v1203_v17 = vpop.eup %1202  ;;  %v676_v60 = vsub.f32 %v612_v40, %v644_v33 }
 0x21a   :  { %v675_v4 = vsub.f32 %v611_v28, %v643_v59  ;;  %v1205_v39 = vpop.eup %1204  ;;  %v834_v44 = vmul.f32 %v1203_v17, %v738_v48  ;;  %v560_v54 = vpop.xlane.xlu1 %559 }
 0x21b   :  { %v558_v9 = vpop.xlane.xlu0 %557  ;;  %v833_v55 = vmul.f32 %v1205_v39, %v737_v46  ;;  %v708_v0 = vmax.f32 %v676_v60, 0.0  ;;  %v628_v34 = vmul.f32 0.03125, %v560_v54  ;;  %v740_v39 = vsub.f32 %v1616_v18, %v1831_v15 }
 0x21c   :  { %v707_v6 = vmax.f32 %v675_v4, 0.0  ;;  %v873_v3 = vmul.f32 %v1703_v20, %v834_v44  ;;  %v627_v23 = vmul.f32 0.03125, %v558_v9 }
 0x21d   :  { %v1207_v7 = vpop.eup %1206  ;;  %v872_v62 = vmul.f32 %v1703_v20, %v833_v55  ;;  %v772_v61 = vadd.f32 1e-12, %v708_v0  ;;  %v692_v63 = vsub.f32 %v628_v34, %v660_v41  ;;  %v739_v41 = vsub.f32 %v1619_v13, %v1833_v14 }
 0x21e   :  { %v771_v11 = vadd.f32 1e-12, %v707_v6  ;;  %v1209_v21 = vpop.eup %1208  ;;  %v912_v50 = vadd.f32 %v1714_v1, %v873_v3  ;;  %v850_v57 = vmul.f32 %v1207_v7, %v754_v47  ;;  %v691_v22 = vsub.f32 %v627_v23, %v659_v12  ;;  %v436_v36 = vpop.xlane.xlu1 %435 }
 0x21f   :  { %v434_v31 = vpop.xlane.xlu0 %433  ;;  %v911_v8 = vadd.f32 %v1714_v1, %v872_v62  ;;  %v849_v51 = vmul.f32 %v1209_v21, %v753_v45  ;;  %1210 = vrsqrt.f32 %v772_v61  ;;  %v724_v49 = vmax.f32 %v692_v63, 0.0 }
 0x220   :  { %944 = vst [vmem:[#allocation8 + $0x48] sm:$0xff] %v912_v50  ;;  %v889_v56 = vmul.f32 %v1703_v20, %v850_v57  ;;  %1212 = vrsqrt.f32 %v771_v11  ;;  %v723_v19 = vmax.f32 %v691_v22, 0.0  ;;  %v1863_v33 = vmul.f32 0.03125, %v436_v36 }
 0x221   :  { %943 = vst [vmem:[#allocation8 + $0x40] sm:$0xff] %v911_v8  ;;  %v888_v5 = vmul.f32 %v1703_v20, %v849_v51  ;;  %v788_v32 = vadd.f32 1e-12, %v724_v49  ;;  %v1865_v59 = vmul.f32 0.03125, %v434_v31  ;;  %v756_v0 = vsub.f32 %v1622_v29, %v1835_v27 }
 0x222   :  { %v928_v2 = vadd.f32 %v1714_v1, %v889_v56  ;;  %v787_v35 = vadd.f32 1e-12, %v723_v19  ;;  %v468_v24 = vpop.xlane.xlu1 %467  ;;  %v646_v17 = vmul.f32 %v1863_v33, %v1863_v33  ;;  %v755_v7 = vsub.f32 %v1625_v30, %v1843_v52 }
 0x223   :  { %v466_v16 = vpop.xlane.xlu0 %465  ;;  %v927_v10 = vadd.f32 %v1714_v1, %v888_v5  ;;  %1214 = vrsqrt.f32 %v788_v32  ;;  %v1867_v40 = vmul.f32 0.03125, %v468_v24  ;;  %v645_v46 = vmul.f32 %v1865_v59, %v1865_v59 }
 0x224   :  { %960 = vst [vmem:[#allocation8 + $0xc8] sm:$0xff] %v928_v2  ;;  %1216 = vrsqrt.f32 %v787_v35  ;;  %v1875_v47 = vmul.f32 0.03125, %v466_v16 }
 0x225   :  { %959 = vst [vmem:[#allocation8 + $0xc0] sm:$0xff] %v927_v10  ;;  %v662_v34 = vmul.f32 %v1867_v40, %v1867_v40 }
 0x226   :  { %v532_v28 = vpop.xlane.xlu1 %531  ;;  %v661_v14 = vmul.f32 %v1875_v47, %v1875_v47 }
 0x227   :  { %v530_v48 = vpop.xlane.xlu0 %529  ;;  %v614_v60 = vmul.f32 0.03125, %v532_v28 }
 0x228   :  { %v613_v4 = vmul.f32 0.03125, %v530_v48 }
 0x229   :  { %v1211_v44 = vpop.eup %1210  ;;  %v678_v54 = vsub.f32 %v614_v60, %v646_v17 }
 0x22a   :  { %v677_v9 = vsub.f32 %v613_v4, %v645_v46  ;;  %v1213_v55 = vpop.eup %1212  ;;  %v836_v6 = vmul.f32 %v1211_v44, %v740_v39  ;;  %v564_v45 = vpop.xlane.xlu1 %563  ;;  %v742_v44 = vsub.f32 %v1640_v37, %v1863_v33 }
 0x22b   :  { %v562_v3 = vpop.xlane.xlu0 %561  ;;  %v835_v12 = vmul.f32 %v1213_v55, %v739_v41  ;;  %v710_v18 = vmax.f32 %v678_v54, 0.0  ;;  %v630_v23 = vmul.f32 0.03125, %v564_v45 }
 0x22c   :  { %v709_v15 = vmax.f32 %v677_v9, 0.0  ;;  %v875_v13 = vmul.f32 %v1703_v20, %v836_v6  ;;  %v629_v62 = vmul.f32 0.03125, %v562_v3  ;;  %v741_v9 = vsub.f32 %v1643_v38, %v1865_v59 }
 0x22d   :  { %v1215_v29 = vpop.eup %1214  ;;  %v874_v27 = vmul.f32 %v1703_v20, %v835_v12  ;;  %v774_v61 = vadd.f32 1e-12, %v710_v18  ;;  %v694_v63 = vsub.f32 %v630_v23, %v662_v34  ;;  %v758_v34 = vsub.f32 %v1646_v42, %v1867_v40 }
 0x22e   :  { %v773_v11 = vadd.f32 1e-12, %v709_v15  ;;  %v1217_v21 = vpop.eup %1216  ;;  %v914_v50 = vadd.f32 %v1714_v1, %v875_v13  ;;  %v852_v57 = vmul.f32 %v1215_v29, %v756_v0  ;;  %v693_v22 = vsub.f32 %v629_v62, %v661_v14  ;;  %v440_v36 = vpop.xlane.xlu1 %439 }
 0x22f   :  { %v438_v31 = vpop.xlane.xlu0 %437  ;;  %v913_v30 = vadd.f32 %v1714_v1, %v874_v27  ;;  %v851_v52 = vmul.f32 %v1217_v21, %v755_v7  ;;  %1218 = vrsqrt.f32 %v774_v61  ;;  %v726_v8 = vmax.f32 %v694_v63, 0.0 }
 0x230   :  { %946 = vst [vmem:[#allocation8 + $0x58] sm:$0xff] %v914_v50  ;;  %v891_v51 = vmul.f32 %v1703_v20, %v852_v57  ;;  %1220 = vrsqrt.f32 %v773_v11  ;;  %v725_v49 = vmax.f32 %v693_v22, 0.0  ;;  %v1895_v16 = vmul.f32 0.03125, %v440_v36 }
 0x231   :  { %945 = vst [vmem:[#allocation8 + $0x50] sm:$0xff] %v913_v30  ;;  %v890_v56 = vmul.f32 %v1703_v20, %v851_v52  ;;  %v790_v19 = vadd.f32 1e-12, %v726_v8  ;;  %v1897_v10 = vmul.f32 0.03125, %v438_v31  ;;  %v757_v7 = vsub.f32 %v1649_v43, %v1875_v47 }
 0x232   :  { %v930_v5 = vadd.f32 %v1714_v1, %v891_v51  ;;  %v789_v32 = vadd.f32 1e-12, %v725_v49  ;;  %v472_v2 = vpop.xlane.xlu1 %471  ;;  %v648_v46 = vmul.f32 %v1895_v16, %v1895_v16  ;;  %v744_v8 = vsub.f32 %v1664_v25, %v1895_v16 }
 0x233   :  { %v470_v35 = vpop.xlane.xlu0 %469  ;;  %v929_v24 = vadd.f32 %v1714_v1, %v890_v56  ;;  %1222 = vrsqrt.f32 %v790_v19  ;;  %v1899_v28 = vmul.f32 0.03125, %v472_v2  ;;  %v647_v60 = vmul.f32 %v1897_v10, %v1897_v10 }
 0x234   :  { %962 = vst [vmem:[#allocation8 + $0xd8] sm:$0xff] %v930_v5  ;;  %1224 = vrsqrt.f32 %v789_v32  ;;  %v599_v41 = vmul.f32 0.03125, %v470_v35  ;;  %v743_v49 = vsub.f32 %v1667_v53, %v1897_v10 }
 0x235   :  { %961 = vst [vmem:[#allocation8 + $0xd0] sm:$0xff] %v929_v24  ;;  %v664_v3 = vmul.f32 %v1899_v28, %v1899_v28  ;;  %v760_v32 = vsub.f32 %v1670_v26, %v1899_v28 }
 0x236   :  { %v536_v48 = vpop.xlane.xlu1 %535  ;;  %v663_v59 = vmul.f32 %v599_v41, %v599_v41  ;;  %v759_v24 = vsub.f32 %v1673_v58, %v599_v41 }
 0x237   :  { %v534_v17 = vpop.xlane.xlu0 %533  ;;  %v616_v4 = vmul.f32 0.03125, %v536_v48 }
 0x238   :  { %v615_v39 = vmul.f32 0.03125, %v534_v17 }
 0x239   :  { %v1219_v54 = vpop.eup %1218  ;;  %v680_v55 = vsub.f32 %v616_v4, %v648_v46 }
 0x23a   :  { %v679_v0 = vsub.f32 %v615_v39, %v647_v60  ;;  %v1221_v6 = vpop.eup %1220  ;;  %v838_v45 = vmul.f32 %v1219_v54, %v742_v44  ;;  %v568_v12 = vpop.xlane.xlu1 %567 }
 0x23b   :  { %v566_v18 = vpop.xlane.xlu0 %565  ;;  %v837_v15 = vmul.f32 %v1221_v6, %v741_v9  ;;  %v712_v23 = vmax.f32 %v680_v55, 0.0  ;;  %v632_v33 = vmul.f32 0.03125, %v568_v12 }
 0x23c   :  { %v711_v37 = vmax.f32 %v679_v0, 0.0  ;;  %v877_v38 = vmul.f32 %v1703_v20, %v838_v45  ;;  %v631_v13 = vmul.f32 0.03125, %v566_v18 }
 0x23d   :  { %v1223_v14 = vpop.eup %1222  ;;  %v876_v42 = vmul.f32 %v1703_v20, %v837_v15  ;;  %v776_v40 = vadd.f32 1e-12, %v712_v23  ;;  %v696_v29 = vsub.f32 %v632_v33, %v664_v3 }
 0x23e   :  { %v775_v62 = vadd.f32 1e-12, %v711_v37  ;;  %v1225_v27 = vpop.eup %1224  ;;  %v916_v61 = vadd.f32 %v1714_v1, %v877_v38  ;;  %v854_v11 = vmul.f32 %v1223_v14, %v758_v34  ;;  %v695_v63 = vsub.f32 %v631_v13, %v663_v59 }
 0x23f   :  { %v915_v21 = vadd.f32 %v1714_v1, %v876_v42  ;;  %v853_v50 = vmul.f32 %v1225_v27, %v757_v7  ;;  %1226 = vrsqrt.f32 %v776_v40  ;;  %v728_v43 = vmax.f32 %v696_v29, 0.0 }
 0x240   :  { %948 = vst [vmem:[#allocation8 + $0x68] sm:$0xff] %v916_v61  ;;  %v893_v47 = vmul.f32 %v1703_v20, %v854_v11  ;;  %1228 = vrsqrt.f32 %v775_v62  ;;  %v727_v57 = vmax.f32 %v695_v63, 0.0 }
 0x241   :  { %947 = vst [vmem:[#allocation8 + $0x60] sm:$0xff] %v915_v21  ;;  %v892_v22 = vmul.f32 %v1703_v20, %v853_v50  ;;  %v792_v36 = vadd.f32 1e-12, %v728_v43 }
 0x242   :  { %v932_v31 = vadd.f32 %v1714_v1, %v893_v47  ;;  %v791_v30 = vadd.f32 1e-12, %v727_v57 }
 0x243   :  { %v931_v52 = vadd.f32 %v1714_v1, %v892_v22  ;;  %1230 = vrsqrt.f32 %v792_v36 }
 0x244   :  { %964 = vst [vmem:[#allocation8 + $0xe8] sm:$0xff] %v932_v31  ;;  %1232 = vrsqrt.f32 %v791_v30 }
 0x245   :  { %963 = vst [vmem:[#allocation8 + $0xe0] sm:$0xff] %v931_v52 }
 0x249   :  { %v1227_v51 = vpop.eup %1226 }
 0x24a   :  { %v1229_v56 = vpop.eup %1228  ;;  %v840_v19 = vmul.f32 %v1227_v51, %v744_v8 }
 0x24b   :  { %v839_v5 = vmul.f32 %v1229_v56, %v743_v49 }
 0x24c   :  { %v879_v2 = vmul.f32 %v1703_v20, %v840_v19 }
 0x24d   :  { %v1231_v35 = vpop.eup %1230  ;;  %v878_v48 = vmul.f32 %v1703_v20, %v839_v5 }
 0x24e   :  { %v1233_v17 = vpop.eup %1232  ;;  %v918_v25 = vadd.f32 %v1714_v1, %v879_v2  ;;  %v856_v16 = vmul.f32 %v1231_v35, %v760_v32 }
 0x24f   :  { %v917_v46 = vadd.f32 %v1714_v1, %v878_v48  ;;  %v855_v53 = vmul.f32 %v1233_v17, %v759_v24 }
 0x250   :  { %950 = vst [vmem:[#allocation8 + $0x78] sm:$0xff] %v918_v25  ;;  %v895_v10 = vmul.f32 %v1703_v20, %v856_v16 }
 0x251   :  { %949 = vst [vmem:[#allocation8 + $0x70] sm:$0xff] %v917_v46  ;;  %v894_v26 = vmul.f32 %v1703_v20, %v855_v53 }
 0x252   :  { %v934_v28 = vadd.f32 %v1714_v1, %v895_v10 }
 0x253   :  { %v933_v58 = vadd.f32 %v1714_v1, %v894_v26 }
 0x254   :  { %966 = vst [vmem:[#allocation8 + $0xf8] sm:$0xff] %v934_v28 }
 0x255   :  { %965 = vst [vmem:[#allocation8 + $0xf0] sm:$0xff] %v933_v58 }
 0x256   :  { %1311 = shalt.err (!%p1308_p0)
}
 0x257   :  { %s1312_s18 = scalar_lea.hbm %s1959_s6, 4096 }
 0x258   :  { %p1313_p1 = scmp.ne.s32.totalorder %s1959_s6, %s1312_s18  ;;  %p1316_p2 = scmp.lt.u32.totalorder %s1312_s18, %s1959_s6 }
 0x25a   :  { %p1318_p3 = pnand %p1316_p2, %p1313_p1 }
 0x25c   :  { %1321 = shalt.err (!%p1318_p3)
}
 0x25d   :  { %978 = dma.vmem_to_hbm [thread:$0]  %s973_s5, 4096, %s1959_s6, [#allocation4], %s1330_s9, %s1330_s9, %s1331_s10  }
 0x25e   :  { %1326 = dma.done.wait [#allocation4], 4096  }
 0x25f   :  { %1327 = vsyncadd [#allocation4], 4294963200 }
 0x260   :  { %982 = vsyncpa [#allocation3], 1 }
 0x261   :  { %983 = vsyncpa [#allocation6], 1 }
 0x262   :  { %984 = vsyncpa [#allocation4], 1 }

</bundles_post_ra>
